<compile_context>
chip_gen: v7x
topology: tpu7x:2x2x1
jax: 0.10.0
libtpu: 0.0.40
codegen_flags: <defaults>
</compile_context>

<pallas_src>
import math

import jax
import jax.numpy as jnp
from jax import lax
from jax.experimental import pallas as pl
from jax.experimental.pallas import tpu as pltpu


# ----------------------------------------------------------------------------
# Fused Bottleneck kernel: runs entirely in VMEM for one tile of rows.
# ----------------------------------------------------------------------------
def _bottleneck_kernel(p_ref, xs_ref, w2_ref, b2_ref, w3_ref, b3_ref,
                       wsc_ref, bsc_ref, o_ref):
    # conv2 (3x3 via im2col) + folded bn2 + ReLU  -- main MXU matmul, bf16 in,
    # f32 accumulate.
    h = jnp.dot(p_ref[...], w2_ref[...], preferred_element_type=jnp.float32)
    h = jnp.maximum(h + b2_ref[...], 0.0)

    # conv3 (1x1) + folded bn3.  Tiny matmul; keep the intermediate activation
    # in f32 (no extra rounding step), weights were stored bf16.
    out = jnp.dot(h, w3_ref[...].astype(jnp.float32),
                  preferred_element_type=jnp.float32) + b3_ref[...]

    # Projection shortcut: 1x1 strided conv (stride folded into row sampling
    # outside) + folded bn.
    sc = jnp.dot(xs_ref[...], wsc_ref[...],
                 preferred_element_type=jnp.float32) + bsc_ref[...]

    o_ref[...] = jnp.maximum(out + sc, 0.0).astype(o_ref.dtype)


# ----------------------------------------------------------------------------
# Parameter construction (deterministic) and BN folding
# ----------------------------------------------------------------------------
def _fold_bn(gamma, beta, mean, var, eps=1e-5):
    scale = gamma / jnp.sqrt(var + eps)
    return scale, beta - mean * scale


def _init_conv(key, kh, kw, cin, cout):
    fan_in = kh * kw * cin
    return jax.random.normal(key, (kh, kw, cin, cout), jnp.float32) / math.sqrt(fan_in)


def _init_bn(key, c):
    k1, k2, k3, k4 = jax.random.split(key, 4)
    gamma = jax.random.uniform(k1, (c,), jnp.float32, 0.5, 1.5)
    beta = jax.random.normal(k2, (c,), jnp.float32) * 0.1
    mean = jax.random.normal(k3, (c,), jnp.float32) * 0.1
    var = jax.random.uniform(k4, (c,), jnp.float32, 0.5, 1.5)
    return _fold_bn(gamma, beta, mean, var)


def build_bottleneck_params(key, in_planes, planes, expansion=4):
    cout = expansion * planes
    ks = jax.random.split(key, 8)
    return {
        # conv1/bn1 exist in the module but their output is discarded by the
        # forward pass (see note at top of file).
        "conv1_w": _init_conv(ks[0], 1, 1, in_planes, planes),
        "bn1": _init_bn(ks[1], planes),
        "conv2_w": _init_conv(ks[2], 3, 3, planes, planes),
        "bn2": _init_bn(ks[3], planes),
        "conv3_w": _init_conv(ks[4], 1, 1, planes, cout),
        "bn3": _init_bn(ks[5], cout),
        "sc_w": _init_conv(ks[6], 1, 1, in_planes, cout),
        "bn_sc": _init_bn(ks[7], cout),
    }


def _prepare_operands(params):
    """Fold BN scale into weight columns; bf16 weights, f32 biases."""
    s2, b2 = params["bn2"]
    s3, b3 = params["bn3"]
    ssc, bsc = params["bn_sc"]
    w2 = (params["conv2_w"].astype(jnp.float32) * s2).astype(jnp.bfloat16)
    w3 = (params["conv3_w"].astype(jnp.float32) * s3).astype(jnp.bfloat16)
    wsc = (params["sc_w"].astype(jnp.float32) * ssc).astype(jnp.bfloat16)
    return {
        "w2": w2, "b2": b2.reshape(1, -1).astype(jnp.float32),
        "w3": w3, "b3": b3.reshape(1, -1).astype(jnp.float32),
        "wsc": wsc, "bsc": bsc.reshape(1, -1).astype(jnp.float32),
    }


def _round_up(a, b):
    return (a + b - 1) // b * b


# ----------------------------------------------------------------------------
# Pallas forward (single fused pallas_call) and a lax.conv reference
# ----------------------------------------------------------------------------
def bottleneck_forward_pallas(x_nchw, params, stride=1):
    x = jnp.transpose(x_nchw.astype(jnp.float32), (0, 2, 3, 1))  # NCHW -> NHWC
    N, H, W, Cin = x.shape
    ops = _prepare_operands(params)
    planes = ops["w2"].shape[-1]
    cout = ops["w3"].shape[-1]
    assert ops["w2"].shape[2] == Cin, "module forward requires in_planes == planes"

    Hout = (H + 2 - 3) // stride + 1
    Wout = (W + 2 - 3) // stride + 1
    M = N * Hout * Wout
    K2 = 9 * Cin

    # bf16 activations: im2col patches for the 3x3 conv, strided samples for the
    # 1x1 projection shortcut.  Batch is folded into the row (M) dimension.
    xb = x.astype(jnp.bfloat16)
    xp = jnp.pad(xb, ((0, 0), (1, 1), (1, 1), (0, 0)))
    cols = []
    for kh in range(3):
        for kw in range(3):
            cols.append(xp[:, kh:kh + (Hout - 1) * stride + 1:stride,
                            kw:kw + (Wout - 1) * stride + 1:stride, :])
    patches = jnp.concatenate(cols, axis=-1).reshape(M, K2)
    xs = xb[:, ::stride, ::stride, :].reshape(M, Cin)

    w2 = ops["w2"].reshape(K2, planes)
    w3 = ops["w3"].reshape(planes, cout)
    wsc = ops["wsc"].reshape(Cin, cout)

    # Row tiling: at least 2 row tiles when possible so both v7x TensorCores
    # get parallel work; tile rows are multiples of 8 (sublanes).
    M8 = _round_up(M, 8)
    if M8 >= 16:
        TM = min(512, _round_up((M8 + 1) // 2, 8))
    else:
        TM = M8
    Mpad = _round_up(M8, TM)
    if Mpad != M:
        patches = jnp.pad(patches, ((0, Mpad - M), (0, 0)))
        xs = jnp.pad(xs, ((0, Mpad - M), (0, 0)))
    grid = Mpad // TM

    out = pl.pallas_call(
        _bottleneck_kernel,
        out_shape=jax.ShapeDtypeStruct((Mpad, cout), jnp.float32),
        grid=(grid,),
        in_specs=[
            pl.BlockSpec((TM, K2), lambda i: (i, 0)),       # im2col patches
            pl.BlockSpec((TM, Cin), lambda i: (i, 0)),      # shortcut rows
            pl.BlockSpec((K2, planes), lambda i: (0, 0)),   # w2 (bn2 folded)
            pl.BlockSpec((1, planes), lambda i: (0, 0)),    # b2
            pl.BlockSpec((planes, cout), lambda i: (0, 0)),  # w3 (bn3 folded)
            pl.BlockSpec((1, cout), lambda i: (0, 0)),      # b3
            pl.BlockSpec((Cin, cout), lambda i: (0, 0)),    # wsc (bn_sc folded)
            pl.BlockSpec((1, cout), lambda i: (0, 0)),      # bsc
        ],
        out_specs=pl.BlockSpec((TM, cout), lambda i: (i, 0)),
        compiler_params=pltpu.CompilerParams(
            dimension_semantics=("parallel",)),
    )(patches, xs, w2, ops["b2"], w3, ops["b3"], wsc, ops["bsc"])

    y = out[:M].reshape(N, Hout, Wout, cout)
    return jnp.transpose(y, (0, 3, 1, 2))  # NHWC -> NCHW


def _conv_nhwc(x, w, stride, padding):
    return lax.conv_general_dilated(
        x, w, (stride, stride), [(padding, padding), (padding, padding)],
        dimension_numbers=("NHWC", "HWIO", "NHWC"))


def bottleneck_forward_ref(x_nchw, params, stride=1):
    """Pure-JAX reference of the module forward (eval-mode BN), using the same
    bf16-rounded operands as the Pallas path so the comparison is tight."""
    x = jnp.transpose(x_nchw.astype(jnp.float32), (0, 2, 3, 1))
    ops = _prepare_operands(params)
    xb = x.astype(jnp.bfloat16).astype(jnp.float32)
    w2 = ops["w2"].astype(jnp.float32)
    w3 = ops["w3"].astype(jnp.float32)
    wsc = ops["wsc"].astype(jnp.float32)
    # NOTE: relu(bn1(conv1(x))) is computed and immediately discarded in the
    # PyTorch forward (conv2 consumes x), so it is omitted here.
    h = jnp.maximum(_conv_nhwc(xb, w2, stride, 1) + ops["b2"], 0.0)
    out = _conv_nhwc(h, w3, 1, 0) + ops["b3"]
    sc = _conv_nhwc(xb, wsc, stride, 0) + ops["bsc"]
    y = jnp.maximum(out + sc, 0.0)
    return jnp.transpose(y, (0, 3, 1, 2))


# ----------------------------------------------------------------------------
if __name__ == "__main__":
    key = jax.random.PRNGKey(0)
    k_x, k_p = jax.random.split(key)

    # Small shapes consistent with Bottleneck: expansion=4, planes=32 so the
    # output channel count is lane-dense (128); in_planes must equal planes
    # because the module's forward feeds x directly into conv2.
    N, H, W = 2, 16, 16
    planes = 32
    in_planes = planes
    expansion = 4

    x = jax.random.normal(k_x, (N, in_planes, H, W), jnp.float32)
    params = build_bottleneck_params(k_p, in_planes, planes, expansion)

    # stride=2 (downsampling block)
    out2 = jax.block_until_ready(bottleneck_forward_pallas(x, params, stride=2))
    ref2 = jax.block_until_ready(bottleneck_forward_ref(x, params, stride=2))
    assert out2.shape == (N, expansion * planes, H // 2, W // 2), out2.shape
    assert jnp.allclose(out2, ref2, atol=1e-3, rtol=1e-3), (
        float(jnp.max(jnp.abs(out2 - ref2))))

    # stride=1 (projection shortcut still present: in_planes != 4*planes)
    out1 = jax.block_until_ready(bottleneck_forward_pallas(x, params, stride=1))
    ref1 = jax.block_until_ready(bottleneck_forward_ref(x, params, stride=1))
    assert out1.shape == (N, expansion * planes, H, W), out1.shape
    assert jnp.allclose(out1, ref1, atol=1e-3, rtol=1e-3), (
        float(jnp.max(jnp.abs(out1 - ref1))))

    print("KERNEL_OK")
</pallas_src>

<mosaic_0001>
module attributes {stable_mosaic.version = 11 : i64} {
  func.func @_bottleneck_kernel(%arg0: i32, %arg1: memref<64x288xbf16, #tpu.memory_space<vmem>>, %arg2: memref<64x32xbf16, #tpu.memory_space<vmem>>, %arg3: memref<288x32xbf16, #tpu.memory_space<vmem>>, %arg4: memref<1x32xf32, #tpu.memory_space<vmem>>, %arg5: memref<32x128xbf16, #tpu.memory_space<vmem>>, %arg6: memref<1x128xf32, #tpu.memory_space<vmem>>, %arg7: memref<32x128xbf16, #tpu.memory_space<vmem>>, %arg8: memref<1x128xf32, #tpu.memory_space<vmem>>, %arg9: memref<64x128xf32, #tpu.memory_space<vmem>>) attributes {dimension_semantics = [#tpu.dimension_semantics<parallel>], iteration_bounds = array<i64: 2>, scalar_prefetch = 0 : i64, scratch_operands = 0 : i64, tpu.core_type = #tpu.core_type<tc>, window_params = [{transform_indices = @transform_0, window_bounds = array<i64: 64, 288>}, {transform_indices = @transform_1, window_bounds = array<i64: 64, 32>}, {pipeline_mode = #tpu.pipeline_mode<synchronous>, transform_indices = @transform_2, window_bounds = array<i64: 288, 32>}, {pipeline_mode = #tpu.pipeline_mode<synchronous>, transform_indices = @transform_3, window_bounds = array<i64: 1, 32>}, {pipeline_mode = #tpu.pipeline_mode<synchronous>, transform_indices = @transform_4, window_bounds = array<i64: 32, 128>}, {pipeline_mode = #tpu.pipeline_mode<synchronous>, transform_indices = @transform_5, window_bounds = array<i64: 1, 128>}, {pipeline_mode = #tpu.pipeline_mode<synchronous>, transform_indices = @transform_6, window_bounds = array<i64: 32, 128>}, {pipeline_mode = #tpu.pipeline_mode<synchronous>, transform_indices = @transform_7, window_bounds = array<i64: 1, 128>}, {transform_indices = @transform_8, window_bounds = array<i64: 64, 128>}]} {
    %c0 = arith.constant 0 : index
    %c0_0 = arith.constant 0 : index
    %0 = vector.load %arg1[%c0, %c0_0] : memref<64x288xbf16, #tpu.memory_space<vmem>>, vector<64x288xbf16>
    %c0_1 = arith.constant 0 : index
    %c0_2 = arith.constant 0 : index
    %1 = vector.load %arg3[%c0_1, %c0_2] : memref<288x32xbf16, #tpu.memory_space<vmem>>, vector<288x32xbf16>
    %cst = arith.constant dense<0.000000e+00> : vector<64x32xf32>
    %2 = tpu.matmul %0, %1, %cst {dimension_numbers = #tpu.dot_dimension_numbers<[1], [0], [0], [1], [0, 0, 1, 1], [], []>} : vector<64x288xbf16>, vector<288x32xbf16>, vector<64x32xf32> -> vector<64x32xf32>
    %c0_3 = arith.constant 0 : index
    %c0_4 = arith.constant 0 : index
    %3 = vector.load %arg4[%c0_3, %c0_4] : memref<1x32xf32, #tpu.memory_space<vmem>>, vector<1x32xf32>
    %4 = vector.broadcast %3 : vector<1x32xf32> to vector<64x32xf32>
    %5 = arith.addf %2, %4 : vector<64x32xf32>
    %cst_5 = arith.constant 0.000000e+00 : f32
    %6 = vector.broadcast %cst_5 : f32 to vector<64x32xf32>
    %7 = arith.maximumf %5, %6 : vector<64x32xf32>
    %c0_6 = arith.constant 0 : index
    %c0_7 = arith.constant 0 : index
    %8 = vector.load %arg5[%c0_6, %c0_7] : memref<32x128xbf16, #tpu.memory_space<vmem>>, vector<32x128xbf16>
    %9 = arith.extf %8 : vector<32x128xbf16> to vector<32x128xf32>
    %cst_8 = arith.constant dense<0.000000e+00> : vector<64x128xf32>
    %10 = tpu.matmul %7, %9, %cst_8 {dimension_numbers = #tpu.dot_dimension_numbers<[1], [0], [0], [1], [0, 0, 1, 1], [], []>} : vector<64x32xf32>, vector<32x128xf32>, vector<64x128xf32> -> vector<64x128xf32>
    %c0_9 = arith.constant 0 : index
    %c0_10 = arith.constant 0 : index
    %11 = vector.load %arg6[%c0_9, %c0_10] : memref<1x128xf32, #tpu.memory_space<vmem>>, vector<1x128xf32>
    %12 = vector.broadcast %11 : vector<1x128xf32> to vector<64x128xf32>
    %13 = arith.addf %10, %12 : vector<64x128xf32>
    %c0_11 = arith.constant 0 : index
    %c0_12 = arith.constant 0 : index
    %14 = vector.load %arg2[%c0_11, %c0_12] : memref<64x32xbf16, #tpu.memory_space<vmem>>, vector<64x32xbf16>
    %c0_13 = arith.constant 0 : index
    %c0_14 = arith.constant 0 : index
    %15 = vector.load %arg7[%c0_13, %c0_14] : memref<32x128xbf16, #tpu.memory_space<vmem>>, vector<32x128xbf16>
    %cst_15 = arith.constant dense<0.000000e+00> : vector<64x128xf32>
    %16 = tpu.matmul %14, %15, %cst_15 {dimension_numbers = #tpu.dot_dimension_numbers<[1], [0], [0], [1], [0, 0, 1, 1], [], []>} : vector<64x32xbf16>, vector<32x128xbf16>, vector<64x128xf32> -> vector<64x128xf32>
    %c0_16 = arith.constant 0 : index
    %c0_17 = arith.constant 0 : index
    %17 = vector.load %arg8[%c0_16, %c0_17] : memref<1x128xf32, #tpu.memory_space<vmem>>, vector<1x128xf32>
    %18 = vector.broadcast %17 : vector<1x128xf32> to vector<64x128xf32>
    %19 = arith.addf %16, %18 : vector<64x128xf32>
    %20 = arith.addf %13, %19 : vector<64x128xf32>
    %cst_18 = arith.constant 0.000000e+00 : f32
    %21 = vector.broadcast %cst_18 : f32 to vector<64x128xf32>
    %22 = arith.maximumf %20, %21 : vector<64x128xf32>
    %c0_19 = arith.constant 0 : index
    %c0_20 = arith.constant 0 : index
    %23 = vector.load %arg9[%c0_19, %c0_20] : memref<64x128xf32, #tpu.memory_space<vmem>>, vector<64x128xf32>
    tpu.vector_store %arg9[%c0_19, %c0_20], %22 {strides = array<i32>} : memref<64x128xf32, #tpu.memory_space<vmem>>, vector<64x128xf32>,
    return
  }
  func.func @transform_0(%arg0: i32) -> (i32, i32) {
    %c0_i32 = arith.constant 0 : i32
    %c0_i32_0 = arith.constant 0 : i32
    return %arg0, %c0_i32 : i32, i32
  }
  func.func @transform_1(%arg0: i32) -> (i32, i32) {
    %c0_i32 = arith.constant 0 : i32
    %c0_i32_0 = arith.constant 0 : i32
    return %arg0, %c0_i32 : i32, i32
  }
  func.func @transform_2(%arg0: i32) -> (i32, i32) {
    %c0_i32 = arith.constant 0 : i32
    %c0_i32_0 = arith.constant 0 : i32
    %c0_i32_1 = arith.constant 0 : i32
    return %c0_i32, %c0_i32_0 : i32, i32
  }
  func.func @transform_3(%arg0: i32) -> (i32, i32) {
    %c0_i32 = arith.constant 0 : i32
    %c0_i32_0 = arith.constant 0 : i32
    %c0_i32_1 = arith.constant 0 : i32
    return %c0_i32, %c0_i32_0 : i32, i32
  }
  func.func @transform_4(%arg0: i32) -> (i32, i32) {
    %c0_i32 = arith.constant 0 : i32
    %c0_i32_0 = arith.constant 0 : i32
    %c0_i32_1 = arith.constant 0 : i32
    return %c0_i32, %c0_i32_0 : i32, i32
  }
  func.func @transform_5(%arg0: i32) -> (i32, i32) {
    %c0_i32 = arith.constant 0 : i32
    %c0_i32_0 = arith.constant 0 : i32
    %c0_i32_1 = arith.constant 0 : i32
    return %c0_i32, %c0_i32_0 : i32, i32
  }
  func.func @transform_6(%arg0: i32) -> (i32, i32) {
    %c0_i32 = arith.constant 0 : i32
    %c0_i32_0 = arith.constant 0 : i32
    %c0_i32_1 = arith.constant 0 : i32
    return %c0_i32, %c0_i32_0 : i32, i32
  }
  func.func @transform_7(%arg0: i32) -> (i32, i32) {
    %c0_i32 = arith.constant 0 : i32
    %c0_i32_0 = arith.constant 0 : i32
    %c0_i32_1 = arith.constant 0 : i32
    return %c0_i32, %c0_i32_0 : i32, i32
  }
  func.func @transform_8(%arg0: i32) -> (i32, i32) {
    %c0_i32 = arith.constant 0 : i32
    %c0_i32_0 = arith.constant 0 : i32
    return %arg0, %c0_i32 : i32, i32
  }
}

</mosaic_0001>

<bundles_post_ra>
// kernel: tpu_custom_call.1
= control target key start
LH: loop header
LB: loop body
LE: loop exit
PB: predicated region body
PF: predicated region fallthrough
CT: control target
= control target key end

     0   :  { %13 = vsyncpa [#allocation3], 0  ;;  %s1719_s0 = inlined_call_operand.vmem [shape: bf16[128,288], index: 0, kind: input, shape index: {}]   ;;  %s1720_s1 = inlined_call_operand.vmem [shape: bf16[128,32], index: 1, kind: input, shape index: {}]   ;;  %s1721_s2 = inlined_call_operand.vmem [shape: bf16[288,32], index: 2, kind: input, shape index: {}]   ;;  %s1722_s3 = inlined_call_operand.vmem [shape: f32[1,32], index: 3, kind: input, shape index: {}]   ;;  %s1723_s4 = inlined_call_operand.vmem [shape: bf16[32,128], index: 4, kind: input, shape index: {}]   ;;  %s1724_s5 = inlined_call_operand.vmem [shape: f32[1,128], index: 5, kind: input, shape index: {}]   ;;  %s1725_s6 = inlined_call_operand.vmem [shape: bf16[32,128], index: 6, kind: input, shape index: {}]   ;;  %s1726_s7 = inlined_call_operand.vmem [shape: f32[1,128], index: 7, kind: input, shape index: {}]   ;;  %s1727_s8 = inlined_call_operand.hbm [shape: f32[128,128], index: 8, kind: output, shape index: {}]  }
   0x1   :  { %15 = vsyncpa [#allocation3 + $0x1], 0  ;;  %s1484_s27 = smov 0   ;;  %s1486_s28 = smov 0  }
   0x2   :  { %s1488_s29 = smov 0   ;;  %s1490_s30 = smov 0  }
   0x3 LB: > { %s1505_s9 = sadd.s32 4294967295, %s1434_s30   ;;  %s1095_s10 = sadd.s32 4294967294, %s1434_s30   ;;  %s1434_s30 = sphi %s1490_s30, %s1733_s30   ;;  %s1430_s29 = sphi %s1488_s29, %s1732_s29   ;;  %s1426_s28 = sphi %s1486_s28, %s1731_s28   ;;  %s1422_s27 = sphi %s1484_s27, %s1730_s27  }
   0x4   : > { %s1509_s11 = sadd.s32 1, %s1434_s30   ;;  %s206_s12 = sadd.s32 1, %s1430_s29 }
   0x5   : > { %s203_s13 = ssub.s32 %s1434_s30, %s1509_s11  ;;  %p216_p0 = scmp.ne.s32.totalorder %s1430_s29, %s1426_s28 }
   0x6   : > { %p204_p1 = scmp.eq.s32.totalorder %s203_s13, 0  ;;  %p217_p2 = scmp.eq.s32.totalorder %s1505_s9, 1 }
   0x7   : > { %p222_p3 = scmp.ne.s32.totalorder %s1426_s28, %s1422_s27  ;;  %p223_p4 = scmp.eq.s32.totalorder %s1095_s10, 1 }
   0x8   : > { %s1520_s14 = scalar_select %p204_p1, %s1430_s29, %s206_s12  }
   0x9   : > { %p1522_p5 = por %p217_p2, %p216_p0  ;;  %p1526_p6 = por %p223_p4, %p222_p3 }
   0xa   : > { %p1098_p7 = scmp.ge.s32.totalorder %s1434_s30, 1  ;;  %p278_p8 = scmp.lt.s32.totalorder %s1434_s30, 3 }
   0xc   : > { %p279_p9 = pnand %p1098_p7, %p278_p8 }
   0xd   : > { %v1332_v0 = vld [vmem:[%s1721_s2 + $0x40] sm:$0xff] (!%p279_p9)   ;;  %s1100_s19 = sshll.u32 (!%p279_p9), %s1505_s9, 3  ;;  %v1334_v2 = vld [vmem:[%s1721_s2 + $0x48] sm:$0xff] (!%p279_p9)   ;;  %v1336_v4 = vld [vmem:[%s1721_s2 + $0x50] sm:$0xff] (!%p279_p9)   ;;  %vm560_vm0 = vcmask (!%p279_p9), 261120   ;;  %s315_s25 = sand.u32 (!%p279_p9), 1, %s1426_s28  }
   0xe   : > { %282 = sbr.rel (%p279_p9) target bundleno = 541 (0x21d), region = 52  ;;  %v1333_v1 = vld [vmem:[%s1721_s2] sm:$0xff] (!%p279_p9)   ;;  %1174 = vmatprep.subr.bf16.mxu0 (!%p279_p9), %v1332_v0  ;;  %v1335_v3 = vld [vmem:[%s1721_s2 + $0x8] sm:$0xff] (!%p279_p9)   ;;  %p319_p10 = scmp.lt.s32.totalorder (!%p279_p9), %s1100_s19, 15  ;;  %v1337_v5 = vld [vmem:[%s1721_s2 + $0x10] sm:$0xff] (!%p279_p9)  }
   0xf   : > { %1175 = vmatpush3.bf16.msra.mxu0 (!%p279_p9), %v1333_v1  ;;  %v1338_v6 = vld [vmem:[%s1721_s2 + $0x58] sm:$0xff] (!%p279_p9)   ;;  %v1340_v8 = vld [vmem:[%s1721_s2 + $0x60] sm:$0xff] (!%p279_p9)   ;;  %v1342_v11 = vld [vmem:[%s1721_s2 + $0x68] sm:$0xff] (!%p279_p9)   ;;  %s1164_s17 = sshll.u32 (!%p279_p9), %s1505_s9, 10  ;;  %s1678_s9 = scalar_lea.sflag (!%p279_p9), [#allocation3], %s315_s25 }
  0x10   : > { %1176 = vmatprep.subr.bf16.mxu0 (!%p279_p9), %v1334_v2  ;;  %v1339_v7 = vld [vmem:[%s1721_s2 + $0x18] sm:$0xff] (!%p279_p9)   ;;  %v1341_v9 = vld [vmem:[%s1721_s2 + $0x20] sm:$0xff] (!%p279_p9)   ;;  %v1343_v12 = vld [vmem:[%s1721_s2 + $0x28] sm:$0xff] (!%p279_p9)   ;;  %s1436_s26 = smov (!%p279_p9), [#allocation2]  }
  0x11   : > { %v1347_v10 = vld [vmem:[%s1721_s2 + $0x80] sm:$0xff] (!%p279_p9)   ;;  %v1344_v13 = vld [vmem:[%s1721_s2 + $0x70] sm:$0xff] (!%p279_p9)   ;;  %v1352_v15 = vld [vmem:[%s1721_s2 + $0x88] sm:$0xff] (!%p279_p9)  }
  0x12   : > { %1238 = vmatprep.subr.bf16.mxu1 (!%p279_p9), %v1347_v10  ;;  %v1345_v18 = vld [vmem:[%s1721_s2 + $0x30] sm:$0xff] (!%p279_p9)   ;;  %v1346_v19 = vld [vmem:[%s1721_s2 + $0x78] sm:$0xff] (!%p279_p9)   ;;  %v1166_v30 = vld [vmem:[%s1723_s4] sm:$0xff] (!%p279_p9)  }
  0x13   : > { %1177 = vmatpush3.bf16.msra.mxu0 (!%p279_p9), %v1335_v3  ;;  %1239 = vmatpush3.bf16.msra.mxu1 (!%p279_p9), %v1347_v10  ;;  %v1348_v21 = vld [vmem:[%s1721_s2 + $0x38] sm:$0xff] (!%p279_p9)   ;;  %v1173_v31 = vld [vmem:[%s1723_s4 + $0x8] sm:$0xff] (!%p279_p9)   ;;  %v1366_v32 = vld [vmem:[%s1725_s6] sm:$0xff] (!%p279_p9)  }
  0x14   : > { %1178 = vmatprep.subr.bf16.mxu0 (!%p279_p9), %v1336_v4  ;;  %1240 = vmatprep.subr.bf16.mxu1 (!%p279_p9), %v1352_v15  ;;  %v1104_v41 = vld [vmem:[%s1722_s3] ss:$0 sm:$0xff] (!%p279_p9)  ;;  %v1367_v58 = vld [vmem:[%s1725_s6 + $0x8] sm:$0xff] (!%p279_p9)  }
  0x15   : > { %s1735_s19 = smov (!%p319_p10, %s1100_s19), 15 }
  0x16   : > { %s1290_s22 = smul.u32 12, %s1735_s19  ;;  %s1103_s13 = sshll.u32 %s1735_s19, 2 }
  0x17   : > { %1179 = vmatpush3.bf16.msra.mxu0 %v1337_v5  ;;  %1241 = vmatpush3.bf16.msra.mxu1 %v1352_v15  ;;  %s1624_s20 = scalar_lea.vmem %s1720_s1, %s1103_s13  ;;  %s1099_s13 = sshll.u32 %s315_s25, 6 }
  0x18   : > { %1180 = vmatprep.subr.bf16.mxu0 %v1338_v6  ;;  %s1572_s18 = scalar_lea.vmem %s1719_s0, %s1290_s22  ;;  %1283 = vmatprep.subr.bf16.mxu1 %v1166_v30  ;;  %s1669_s19 = scalar_lea.hbm %s1727_s8, %s1164_s17 }
  0x19   : > { %v1351_v14 = vld [vmem:[%s1572_s18 + $0x4] ss:$12 sps:$4 sm:$0xff]   ;;  %v1353_v16 = vld [vmem:[%s1572_s18 + $0x8] ss:$12 sps:$4 sm:$0xff]   ;;  %v1354_v17 = vld [vmem:[%s1572_s18 + $0x20] ss:$12 sps:$4 sm:$0xff]  }
  0x1a   : > { %605 = vmatprep.mubr.bf16.mxu0 %v1351_v14  ;;  %1242 = vmatprep.mubr.msk.bf16.mxu1 %vm560_vm0, %v1353_v16  ;;  %v1361_v20 = vld [vmem:[%s1572_s18 + $0x38] ss:$12 sps:$4 sm:$0xff]   ;;  %v1362_v22 = vld [vmem:[%s1572_s18 + $0x50] ss:$12 sps:$4 sm:$0xff]   ;;  %v1349_v23 = vld [vmem:[%s1572_s18] ss:$12 sps:$4 sm:$0xff]  }
  0x1b   : > { %1181 = vmatpush3.bf16.msra.mxu0 %v1339_v7  ;;  %1243 = vmatmul.mubr.msk.bf16.vlgmr.msra.gmra.mrb[0].mxu1 %vm560_vm0, %v1354_v17  ;;  %v1355_v24 = vld [vmem:[%s1572_s18 + $0x1c] ss:$12 sps:$4 sm:$0xff]   ;;  %v1357_v25 = vld [vmem:[%s1572_s18 + $0x18] ss:$12 sps:$4 sm:$0xff]   ;;  %v1358_v26 = vld [vmem:[%s1572_s18 + $0x34] ss:$12 sps:$4 sm:$0xff]  }
  0x1c   : > { %1182 = vmatprep.subr.bf16.mxu0 %v1340_v8  ;;  %1246 = vmatprep.mubr.msk.bf16.mxu1 %vm560_vm0, %v1361_v20  ;;  %v1360_v27 = vld [vmem:[%s1572_s18 + $0x30] ss:$12 sps:$4 sm:$0xff]   ;;  %v1363_v28 = vld [vmem:[%s1572_s18 + $0x4c] ss:$12 sps:$4 sm:$0xff]   ;;  %v1365_v29 = vld [vmem:[%s1572_s18 + $0x48] ss:$12 sps:$4 sm:$0xff]  }
  0x1d   : > { %1285 = vmatpush3.bf16.msra.mxu1 %v1166_v30  ;;  %v1371_v30 = vld [vmem:[%s1624_s20 + $0x18] sm:$0xff]   ;;  %s1657_s18 = scalar_lea.vmem [#allocation2], %s1099_s13  ;;  %s1376_s22 = sshll.u32 %s1436_s26, 4  ;;  %s1377_s22 = int_to_ptr.vmem [resolvable:$false] %s1376_s22 }
  0x1e   : > { %1287 = vmatprep.subr.bf16.mxu1 %v1173_v31  ;;  %s1378_s10 = scalar_lea.vmem %s1377_s22, 2048 }
  0x1f   : > { %1183 = vmatpush3.bf16.msra.mxu0 %v1341_v9 }
  0x20   : > { %1184 = vmatprep.subr.bf16.mxu0 %v1342_v11 }
  0x21   : > { %1289 = vmatpush3.bf16.msra.mxu1 %v1173_v31 }
  0x22   : > { %1270 = vmatprep.subr.bf16.mxu1 %v1366_v32 }
  0x23   : > { %1185 = vmatpush3.bf16.msra.mxu0 %v1343_v12  ;;  %1247 = vmatmul.mubr.msk.bf16.gmra.mrb[4].mxu1 %vm560_vm0, %v1362_v22 }
  0x24   : > { %1186 = vmatprep.subr.bf16.mxu0 %v1344_v13 }
  0x27   : > { %1187 = vmatpush3.bf16.msra.mxu0 %v1345_v18 }
  0x28   : > { %1188 = vmatprep.subr.bf16.mxu0 %v1346_v19 }
  0x2b   : > { %1189 = vmatpush3.bf16.msra.mxu0 %v1348_v21 }
  0x2e   : > { %606 = vmatmul.mubr.bf16.vlgmr.msra.gmra.mrb[0].mxu0 %v1349_v23 }
  0x2f   : > { %613 = vmatprep.mubr.bf16.mxu0 %v1355_v24 }
  0x36   : > { %614 = vmatmul.mubr.bf16.gmra.mrb[4].mxu0 %v1357_v25 }
  0x37   : > { %621 = vmatprep.mubr.bf16.mxu0 %v1358_v26  ;;  %v1368_v26 = vld [vmem:[%s1624_s20] sm:$0xff]  }
  0x3e   : > { %622 = vmatmul.mubr.bf16.gmra.mrb[8].mxu0 %v1360_v27 }
  0x3f   : > { %629 = vmatprep.mubr.bf16.mxu0 %v1363_v28  ;;  %v1369_v28 = vld [vmem:[%s1624_s20 + $0x8] sm:$0xff]  }
  0x46   : > { %630 = vmatmul.mubr.bf16.gmra.mrb[12].mxu0 %v1365_v29  ;;  %v1370_v29 = vld [vmem:[%s1624_s20 + $0x10] sm:$0xff]   ;;  %s1021_s20 = sshll.u32 %s1657_s18, 4  ;;  %s1671_s20 = int_to_ptr.vmem [resolvable:$true] %s1021_s20 }
  0x47   : > { %s1372_s24 = scalar_lea.vmem %s1671_s20, 1024  ;;  %p1379_p0 = scmp.lt.s32.totalorder %s1671_s20, %s1377_s22 }
  0x48   : > { %p1373_p11 = scmp.ne.s32.totalorder %s1671_s20, %s1372_s24  ;;  %p1380_p1 = scmp.lt.s32.totalorder %s1378_s10, %s1372_s24 }
  0x4a   : > { %p1374_p12 = pnand %p1373_p11, %p1522_p5  ;;  %p1381_p2 = por %p1380_p1, %p1379_p0 }
  0x4c   : > { %p1375_p13 = pneg %p1374_p12 }
  0x4e   : > { %p1382_p3 = pnand %p1381_p2, %p1375_p13 }
  0xee   : > { %v1244_v33 = vpop.f32.mrb[0].mxu1 }
  0xef   : > { %v672_v34 = vpop.f32.mrb[1].mxu1 }
  0xf0   : > { %v1245_v35 = vpop.f32.mrb[2].mxu1 }
  0xf1   : > { %v675_v36 = vpop.f32.mrb[3].mxu1 }
  0xf6   : > { %v1248_v37 = vpop.f32.mrb[4].mxu1 }
  0xf7   : > { %v688_v39 = vpop.f32.mrb[5].mxu1 }
  0xf8   : > { %v1249_v42 = vpop.f32.mrb[6].mxu1 }
  0xf9   : > { %v691_v45 = vpop.f32.mrb[7].mxu1 }
 0x101   : > { %v1190_v38 = vpop.f32.mrb[0].mxu0 }
 0x102   : > { %v1191_v40 = vpop.f32.mrb[1].mxu0 }
 0x103   : > { %v1192_v43 = vadd.f32 %v1191_v40, %v1190_v38  ;;  %v1193_v44 = vpop.f32.mrb[2].mxu0  ;;  %v1139_v40 = vld [vmem:[%s1724_s5] ss:$0 sm:$0xff] }
 0x104   : > { %v1194_v46 = vpop.f32.mrb[3].mxu0 }
 0x105   : > { %v1195_v47 = vadd.f32 %v1194_v46, %v1193_v44  ;;  %v608_v48 = vadd.f32 %v1192_v43, %v1104_v41 }
 0x107   : > { %v673_v49 = vadd.f32 %v672_v34, %v608_v48  ;;  %v611_v50 = vadd.f32 %v1195_v47, %v1104_v41 }
 0x109   : > { %v703_v51 = vmax.f32 %v673_v49, 0.0  ;;  %v676_v52 = vadd.f32 %v675_v36, %v611_v50  ;;  %v1196_v53 = vpop.f32.mrb[4].mxu0 }
 0x10a   : > { %v1197_v54 = vpop.f32.mrb[5].mxu0 }
 0x10b   : > { %v704_v55 = vmax.f32 %v676_v52, 0.0  ;;  %v1198_v56 = vadd.f32 %v1197_v54, %v1196_v53  ;;  %v1199_v57 = vpop.f32.mrb[6].mxu0  ;;  %1258 = vmatprep.mubr.msk.f32.mxu1 %vm560_vm0, %v703_v51 }
 0x10c   : > { %v1200_v59 = vpop.f32.mrb[7].mxu0 }
 0x10d   : > { %v616_v60 = vadd.f32 %v1198_v56, %v1104_v41  ;;  %v1201_v61 = vadd.f32 %v1200_v59, %v1199_v57  ;;  %1259 = vmatmul.mubr.msk.f32.vlgmr.msra.gmra.mrb[8].mxu1 %vm560_vm0, %v704_v55 }
 0x10e   : > { %1271 = vmatpush3.bf16.msra.mxu1 %v1366_v32 }
 0x10f   : > { %v681_v62 = vadd.f32 %v1244_v33, %v616_v60  ;;  %v619_v63 = vadd.f32 %v1201_v61, %v1104_v41  ;;  %1272 = vmatprep.subr.bf16.mxu1 %v1367_v58 }
 0x111   : > { %v705_v0 = vmax.f32 %v681_v62, 0.0  ;;  %v684_v1 = vadd.f32 %v1245_v35, %v619_v63  ;;  %v1202_v2 = vpop.f32.mrb[8].mxu0 }
 0x112   : > { %v1203_v3 = vpop.f32.mrb[9].mxu0  ;;  %1273 = vmatpush3.bf16.msra.mxu1 %v1367_v58 }
 0x113   : > { %v706_v4 = vmax.f32 %v684_v1, 0.0  ;;  %v1204_v5 = vadd.f32 %v1203_v3, %v1202_v2  ;;  %v1205_v6 = vpop.f32.mrb[10].mxu0  ;;  %1261 = vmatprep.mubr.msk.f32.mxu1 %vm560_vm0, %v705_v0 }
 0x114   : > { %v1206_v7 = vpop.f32.mrb[11].mxu0 }
 0x115   : > { %v1207_v8 = vadd.f32 %v1206_v7, %v1205_v6  ;;  %1262 = vmatmul.mubr.msk.f32.gmra.mrb[10].mxu1 %vm560_vm0, %v706_v4  ;;  %v624_v9 = vadd.f32 %v1204_v5, %v1104_v41 }
 0x117   : > { %v689_v10 = vadd.f32 %v688_v39, %v624_v9  ;;  %v627_v11 = vadd.f32 %v1207_v8, %v1104_v41  ;;  %v1148_v39 = vld [vmem:[%s1726_s7] ss:$0 sm:$0xff] }
 0x119   : > { %v707_v12 = vmax.f32 %v689_v10, 0.0  ;;  %v692_v13 = vadd.f32 %v691_v45, %v627_v11  ;;  %v1208_v14 = vpop.f32.mrb[12].mxu0 }
 0x11a   : > { %v1209_v15 = vpop.f32.mrb[13].mxu0 }
 0x11b   : > { %v708_v16 = vmax.f32 %v692_v13, 0.0  ;;  %v1210_v17 = vadd.f32 %v1209_v15, %v1208_v14  ;;  %v1211_v18 = vpop.f32.mrb[14].mxu0  ;;  %1264 = vmatprep.mubr.msk.f32.mxu1 %vm560_vm0, %v707_v12 }
 0x11c   : > { %v1212_v19 = vpop.f32.mrb[15].mxu0 }
 0x11d   : > { %v632_v20 = vadd.f32 %v1210_v17, %v1104_v41  ;;  %v1213_v21 = vadd.f32 %v1212_v19, %v1211_v18  ;;  %1265 = vmatmul.mubr.msk.f32.gmra.mrb[12].mxu1 %vm560_vm0, %v708_v16 }
 0x11f   : > { %v697_v22 = vadd.f32 %v1248_v37, %v632_v20  ;;  %v635_v23 = vadd.f32 %v1213_v21, %v1104_v41 }
 0x121   : > { %v709_v24 = vmax.f32 %v697_v22, 0.0  ;;  %v700_v25 = vadd.f32 %v1249_v42, %v635_v23 }
 0x123   : > { %v710_v27 = vmax.f32 %v700_v25, 0.0  ;;  %1267 = vmatprep.mubr.msk.f32.mxu1 %vm560_vm0, %v709_v24 }
 0x125   : > { %1268 = vmatmul.mubr.msk.f32.gmra.mrb[14].mxu1 %vm560_vm0, %v710_v27 }
 0x126   : > { %1274 = vmatprep.mubr.msk.bf16.mxu1 %vm560_vm0, %v1368_v26 }
 0x129   : > { %1275 = vmatmul.mubr.msk.bf16.vlgmr.msra.gmra.mrb[16].mxu1 %vm560_vm0, %v1369_v28 }
 0x12a   : > { %1278 = vmatprep.mubr.msk.bf16.mxu1 %vm560_vm0, %v1370_v29 }
 0x131   : > { %1279 = vmatmul.mubr.msk.bf16.gmra.mrb[20].mxu1 %vm560_vm0, %v1371_v30 }
 0x1e0   : > { %v1260_v31 = vpop.f32.mrb[8].mxu1 }
 0x1e1   : > { %v816_v32 = vpop.f32.mrb[9].mxu1  ;;  %v822_v52 = vadd.f32 %v1260_v31, %v1139_v40 }
 0x1e2   : > { %v817_v45 = vadd.f32 %v1139_v40, %v816_v32 }
 0x1e8   : > { %v1263_v33 = vpop.f32.mrb[10].mxu1 }
 0x1e9   : > { %v826_v34 = vpop.f32.mrb[11].mxu1  ;;  %v832_v48 = vadd.f32 %v1263_v33, %v1139_v40 }
 0x1ea   : > { %v827_v42 = vadd.f32 %v1139_v40, %v826_v34 }
 0x1f0   : > { %v1266_v35 = vpop.f32.mrb[12].mxu1 }
 0x1f1   : > { %v836_v36 = vpop.f32.mrb[13].mxu1  ;;  %v842_v8 = vadd.f32 %v1266_v35, %v1139_v40 }
 0x1f2   : > { %v837_v1 = vadd.f32 %v1139_v40, %v836_v36 }
 0x1f8   : > { %v1269_v37 = vpop.f32.mrb[14].mxu1 }
 0x1f9   : > { %v846_v38 = vpop.f32.mrb[15].mxu1  ;;  %v852_v4 = vadd.f32 %v1269_v37, %v1139_v40 }
 0x1fa   : > { %v847_v62 = vadd.f32 %v1139_v40, %v846_v38 }
 0x1fc   : > { %v1276_v41 = vpop.f32.mrb[16].mxu1 }
 0x1fd   : > { %v961_v43 = vadd.f32 %v1276_v41, %v1148_v39  ;;  %v952_v44 = vpop.f32.mrb[17].mxu1 }
 0x1fe   : > { %v953_v46 = vadd.f32 %v1148_v39, %v952_v44  ;;  %v1277_v47 = vpop.f32.mrb[18].mxu1 }
 0x1ff   : > { %v985_v49 = vadd.f32 %v961_v43, %v827_v42  ;;  %v964_v50 = vadd.f32 %v1277_v47, %v1148_v39  ;;  %v955_v51 = vpop.f32.mrb[19].mxu1 }
 0x200   : > { %v983_v53 = vadd.f32 %v953_v46, %v817_v45  ;;  %v956_v54 = vadd.f32 %v1148_v39, %v955_v51 }
 0x201   : > { %v993_v55 = vmax.f32 %v985_v49, 0.0  ;;  %v986_v56 = vadd.f32 %v964_v50, %v832_v48 }
 0x202   : > { %v991_v57 = vmax.f32 %v983_v53, 0.0  ;;  %v984_v58 = vadd.f32 %v956_v54, %v822_v52 }
 0x203   : > { %1001 = vst [vmem:[%s1657_s18 + $0x10] sm:$0xff] %v993_v55  ;;  %v994_v59 = vmax.f32 %v986_v56, 0.0 }
 0x204   : > { %999 = vst [vmem:[%s1657_s18] sm:$0xff] %v991_v57  ;;  %v992_v60 = vmax.f32 %v984_v58, 0.0  ;;  %v1280_v61 = vpop.f32.mrb[20].mxu1 }
 0x205   : > { %1002 = vst [vmem:[%s1657_s18 + $0x18] sm:$0xff] %v994_v59  ;;  %v977_v63 = vadd.f32 %v1280_v61, %v1148_v39  ;;  %v968_v0 = vpop.f32.mrb[21].mxu1 }
 0x206   : > { %1000 = vst [vmem:[%s1657_s18 + $0x8] sm:$0xff] %v992_v60  ;;  %v969_v2 = vadd.f32 %v1148_v39, %v968_v0  ;;  %v1281_v3 = vpop.f32.mrb[22].mxu1 }
 0x207   : > { %v989_v5 = vadd.f32 %v977_v63, %v847_v62  ;;  %v980_v6 = vadd.f32 %v1281_v3, %v1148_v39  ;;  %v971_v7 = vpop.f32.mrb[23].mxu1 }
 0x208   : > { %v987_v9 = vadd.f32 %v969_v2, %v837_v1  ;;  %v972_v10 = vadd.f32 %v1148_v39, %v971_v7 }
 0x209   : > { %v997_v11 = vmax.f32 %v989_v5, 0.0  ;;  %v990_v12 = vadd.f32 %v980_v6, %v852_v4 }
 0x20a   : > { %v995_v13 = vmax.f32 %v987_v9, 0.0  ;;  %v988_v14 = vadd.f32 %v972_v10, %v842_v8 }
 0x20b   : > { %1005 = vst [vmem:[%s1657_s18 + $0x30] sm:$0xff] %v997_v11  ;;  %v998_v15 = vmax.f32 %v990_v12, 0.0 }
 0x20c   : > { %1003 = vst [vmem:[%s1657_s18 + $0x20] sm:$0xff] %v995_v13  ;;  %v996_v16 = vmax.f32 %v988_v14, 0.0 }
 0x20d   : > { %1006 = vst [vmem:[%s1657_s18 + $0x38] sm:$0xff] %v998_v15 }
 0x20e   : > { %1004 = vst [vmem:[%s1657_s18 + $0x28] sm:$0xff] %v996_v16 }
 0x20f   : > { %1385 = shalt.err (!%p1382_p3)
}
 0x210   : > { %s1386_s25 = scalar_lea.hbm %s1669_s19, 1024  ;;  %s1390_s18 = scalar_lea.hbm %s1727_s8, 2048 }
 0x211   : > { %p1387_p4 = scmp.ne.s32.totalorder %s1669_s19, %s1386_s25  ;;  %p1391_p9 = scmp.lt.u32.totalorder %s1669_s19, %s1727_s8 }
 0x212   : > { %p1392_p10 = scmp.lt.u32.totalorder %s1390_s18, %s1386_s25  ;;  %p1394_p12 = scmp.lt.u32.totalorder %s1386_s25, %s1669_s19 }
 0x213   : > { %p1388_p7 = pnand %p1387_p4, %p1522_p5 }
 0x214   : > { %p1393_p11 = por %p1392_p10, %p1391_p9 }
 0x215   : > { %p1389_p8 = pneg %p1388_p7 }
 0x216   : > { %p1395_p13 = por %p1394_p12, %p1393_p11 }
 0x218   : > { %p1396_p0 = pnand %p1395_p13, %p1389_p8 }
 0x21a   : > { %1399 = shalt.err (!%p1396_p0)
}
 0x21b   : > { %s1437_s23 = smov 128   ;;  %s1438_s24 = smov 8  }
 0x21c   : > { %1291 = dma.vmem_to_hbm [thread:$0]  (%p1522_p5), %s1671_s20, 1024, %s1669_s19, %s1678_s9, %s1437_s23, %s1437_s23, %s1438_s24  }
 0x21d PF: > { %p1297_p1 = scmp.ge.s32.totalorder %s1434_s30, 2  ;;  %s1036_s26 = sand.u32 1, %s1422_s27  }
 0x21e   : > { %s1037_s22 = scalar_lea.sflag [#allocation3], %s1036_s26 }
 0x21f   : > { %p1294_p2 = pnand %p1297_p1, %p1526_p6 }
 0x221   : > { %1417 = dma.done.wait (!%p1294_p2), %s1037_s22, 1024  }
 0x222   : > { %1419 = vsyncadd (!%p1294_p2), %s1037_s22, 4294966272  ;;  %p18_p3 = scmp.ge.s32.totalorder %s1509_s11, 4   ;;  %s1730_s27 = smov %s1426_s28 }
 0x223   : > { %s1731_s28 = smov %s1430_s29  ;;  %s1732_s29 = smov %s1520_s14 }
 0x224   : > { %s1733_s30 = smov %s1509_s11  ;;  %20 = sbr.rel (!%p18_p3) target bundleno = 3 (0x3), region = 90 }
 0x22b   :  { %1042 = vsyncpa [#allocation3], 1 }
 0x22c   :  { %1044 = vsyncpa [#allocation3 + $0x1], 1 }

</bundles_post_ra>
